<compile_context>
chip_gen: v5e
topology: v5e:2x2
jax: 0.10.0
libtpu: 0.0.40
codegen_flags: <defaults>
</compile_context>

<pallas_src>
import functools

import jax
import jax.numpy as jnp
from jax.experimental import pallas as pl
from jax.experimental.pallas import tpu as pltpu


def _round_up(x, m):
    return ((x + m - 1) // m) * m


def _fused_mlp_kernel(x_ref, w_ref, o_ref, *, num_layers):
    """(Linear -> ReLU) * (L-1), then Linear -> tanh, fully fused.

    x_ref: (tb, Fp) f32 batch tile (bias lane = 1.0)
    w_ref: (L, Fp, Fp) bf16 weight stack with bias folded in as a row
    o_ref: (tb, Fp) f32 output tile

    Intermediate activations live in vregs; weights are VMEM-resident across
    all batch tiles (constant index_map).
    """
    x = x_ref[...]                                           # (tb, Fp) f32
    for layer in range(num_layers):                          # static unroll (L=3)
        w = w_ref[layer]                                     # (Fp, Fp) bf16
        y = jnp.dot(x.astype(jnp.bfloat16), w,
                    preferred_element_type=jnp.float32)      # MXU, f32 acc
        if layer < num_layers - 1:
            x = jnp.maximum(y, 0.0)                          # ReLU (VPU); keeps bias lane 1.0
        else:
            x = jnp.tanh(y)                                  # tanh (EUP)
    o_ref[...] = x.astype(o_ref.dtype)


def init_policy_params(key, num_inputs, num_actions, hidden_sizes):
    """Deterministic init mimicking nn.Linear default U(-1/sqrt(fan_in), .)."""
    sizes = [num_inputs] + list(hidden_sizes) + [num_actions]
    params = []
    for i, o in zip(sizes[:-1], sizes[1:]):
        key, kw, kb = jax.random.split(key, 3)
        bound = 1.0 / jnp.sqrt(jnp.float32(i))
        w = jax.random.uniform(kw, (i, o), jnp.float32, -bound, bound)
        b = jax.random.uniform(kb, (o,), jnp.float32, -bound, bound)
        params.append((w, b))
    return params


def make_policy(key, num_inputs, num_actions, hidden_sizes):
    """Init params and pack them into one bf16 weight stack with folded bias."""
    params = init_policy_params(key, num_inputs, num_actions, hidden_sizes)
    sizes = [num_inputs] + list(hidden_sizes) + [num_actions]
    # +1 guarantees a free lane-dense bias column above every real feature.
    f_pad = _round_up(max(sizes) + 1, 128)
    bias_lane = f_pad - 1
    num_layers = len(params)

    w_all = jnp.zeros((num_layers, f_pad, f_pad), jnp.float32)
    for layer, (w, b) in enumerate(params):
        i, o = w.shape
        w_all = w_all.at[layer, :i, :o].set(w)
        # Fold bias: x[:, bias_lane] == 1.0, so row `bias_lane` adds b.
        w_all = w_all.at[layer, bias_lane, :o].set(b)
        # Keep the bias lane at 1.0 through this layer's output.
        w_all = w_all.at[layer, bias_lane, bias_lane].set(1.0)
    w_all = w_all.astype(jnp.bfloat16)                       # MXU-native operands

    return {
        "w_all": w_all,
        "params": params,                   # unpadded f32 (for reference math)
        "num_inputs": num_inputs,
        "num_actions": num_actions,
        "f_pad": f_pad,
        "bias_lane": bias_lane,
        "num_layers": num_layers,
    }


@functools.partial(
    jax.jit,
    static_argnames=("num_inputs", "num_actions", "f_pad", "bias_lane", "num_layers"),
)
def _policy_forward_impl(w_all, state, *, num_inputs, num_actions, f_pad,
                         bias_lane, num_layers):
    state = state.astype(jnp.float32)
    batch = state.shape[0]

    # Batch tile: fill MXU rows for large batches, stay tiny for rollouts.
    tb = 256 if batch >= 256 else _round_up(max(batch, 8), 8)
    b_pad = _round_up(max(batch, tb), tb)
    num_tiles = b_pad // tb

    # Lane-dense (b_pad, f_pad) slab; bias lane held at 1.0 (fused with the
    # kernel by jit, not a standalone dispatch).
    x_pad = jnp.zeros((b_pad, f_pad), jnp.float32)
    x_pad = x_pad.at[:batch, :num_inputs].set(state)
    x_pad = x_pad.at[:, bias_lane].set(1.0)

    kernel = functools.partial(_fused_mlp_kernel, num_layers=num_layers)
    out_pad = pl.pallas_call(
        kernel,
        out_shape=jax.ShapeDtypeStruct((b_pad, f_pad), jnp.float32),
        grid=(num_tiles,),
        in_specs=[
            pl.BlockSpec((tb, f_pad), lambda i: (i, 0)),
            # Constant index_map: weights DMA'd once, VMEM-resident across tiles.
            pl.BlockSpec((num_layers, f_pad, f_pad), lambda i: (0, 0, 0)),
        ],
        out_specs=pl.BlockSpec((tb, f_pad), lambda i: (i, 0)),
        compiler_params=pltpu.CompilerParams(
            dimension_semantics=("parallel",),      # shard batch across v7x TCs
        ),
    )(x_pad, w_all)

    return out_pad[:batch, :num_actions]


def policy_forward(policy, state):
    """Forward pass of PolicyNetwork via one fused Pallas kernel."""
    return _policy_forward_impl(
        policy["w_all"], state,
        num_inputs=policy["num_inputs"],
        num_actions=policy["num_actions"],
        f_pad=policy["f_pad"],
        bias_lane=policy["bias_lane"],
        num_layers=policy["num_layers"],
    )


def _reference_forward(params, state):
    """Pure-JAX f32 reference matching the PyTorch forward semantics."""
    x = state.astype(jnp.float32)
    for w, b in params[:-1]:
        x = jnp.maximum(x @ w + b, 0.0)
    w, b = params[-1]
    return jnp.tanh(x @ w + b)


if __name__ == "__main__":
    num_inputs = 16
    num_actions = 4
    hidden_sizes = [32, 32]
    batch = 2

    key = jax.random.PRNGKey(0)
    kparams, kx, kx2 = jax.random.split(key, 3)
    policy = make_policy(kparams, num_inputs, num_actions, hidden_sizes)

    # Small rollout-style batch.
    state = jax.random.normal(kx, (batch, num_inputs), jnp.float32)
    out = policy_forward(policy, state)
    jax.block_until_ready(out)

    assert out.shape == (batch, num_actions)
    assert bool(jnp.all(jnp.abs(out) <= 1.0))
    ref = _reference_forward(policy["params"], state)
    # bf16 MXU operands -> loosened tolerance vs. the f32 reference
    # (intentional accuracy/perf trade per review).
    assert bool(jnp.allclose(out, ref, atol=3e-2, rtol=3e-2))

    # Larger batch exercising the batch grid axis (>1 tile) with the
    # VMEM-resident weight stack.
    batch2 = 33
    state2 = jax.random.normal(kx2, (batch2, num_inputs), jnp.float32)
    out2 = policy_forward(policy, state2)
    jax.block_until_ready(out2)
    assert out2.shape == (batch2, num_actions)
    ref2 = _reference_forward(policy["params"], state2)
    assert bool(jnp.allclose(out2, ref2, atol=3e-2, rtol=3e-2))

    print("KERNEL_OK")
</pallas_src>

<mosaic_0001>
module attributes {stable_mosaic.version = 11 : i64} {
  func.func @_fused_mlp_kernel(%arg0: i32, %arg1: memref<8x128xf32, #tpu.memory_space<vmem>>, %arg2: memref<3x128x128xbf16, #tpu.memory_space<vmem>>, %arg3: memref<8x128xf32, #tpu.memory_space<vmem>>) attributes {dimension_semantics = [#tpu.dimension_semantics<parallel>], iteration_bounds = array<i64: 1>, scalar_prefetch = 0 : i64, scratch_operands = 0 : i64, tpu.core_type = #tpu.core_type<tc>, window_params = [{transform_indices = @transform_0, window_bounds = array<i64: 8, 128>}, {pipeline_mode = #tpu.pipeline_mode<synchronous>, transform_indices = @transform_1, window_bounds = array<i64: 3, 128, 128>}, {transform_indices = @transform_2, window_bounds = array<i64: 8, 128>}]} {
    %c0 = arith.constant 0 : index
    %c0_0 = arith.constant 0 : index
    %0 = vector.load %arg1[%c0, %c0_0] : memref<8x128xf32, #tpu.memory_space<vmem>>, vector<8x128xf32>
    %c0_1 = arith.constant 0 : index
    %c0_2 = arith.constant 0 : index
    %c0_3 = arith.constant 0 : index
    %1 = vector.load %arg2[%c0_1, %c0_2, %c0_3] : memref<3x128x128xbf16, #tpu.memory_space<vmem>>, vector<1x128x128xbf16>
    %2 = vector.shape_cast %1 : vector<1x128x128xbf16> to vector<128x128xbf16>
    %3 = arith.truncf %0 : vector<8x128xf32> to vector<8x128xbf16>
    %cst = arith.constant dense<0.000000e+00> : vector<8x128xf32>
    %4 = tpu.matmul %3, %2, %cst {dimension_numbers = #tpu.dot_dimension_numbers<[1], [0], [0], [1], [0, 0, 1, 1], [], []>} : vector<8x128xbf16>, vector<128x128xbf16>, vector<8x128xf32> -> vector<8x128xf32>
    %cst_4 = arith.constant 0.000000e+00 : f32
    %5 = vector.broadcast %cst_4 : f32 to vector<8x128xf32>
    %6 = arith.maximumf %4, %5 : vector<8x128xf32>
    %c1 = arith.constant 1 : index
    %c0_5 = arith.constant 0 : index
    %c0_6 = arith.constant 0 : index
    %7 = vector.load %arg2[%c1, %c0_5, %c0_6] : memref<3x128x128xbf16, #tpu.memory_space<vmem>>, vector<1x128x128xbf16>
    %8 = vector.shape_cast %7 : vector<1x128x128xbf16> to vector<128x128xbf16>
    %9 = arith.truncf %6 : vector<8x128xf32> to vector<8x128xbf16>
    %cst_7 = arith.constant dense<0.000000e+00> : vector<8x128xf32>
    %10 = tpu.matmul %9, %8, %cst_7 {dimension_numbers = #tpu.dot_dimension_numbers<[1], [0], [0], [1], [0, 0, 1, 1], [], []>} : vector<8x128xbf16>, vector<128x128xbf16>, vector<8x128xf32> -> vector<8x128xf32>
    %cst_8 = arith.constant 0.000000e+00 : f32
    %11 = vector.broadcast %cst_8 : f32 to vector<8x128xf32>
    %12 = arith.maximumf %10, %11 : vector<8x128xf32>
    %c2 = arith.constant 2 : index
    %c0_9 = arith.constant 0 : index
    %c0_10 = arith.constant 0 : index
    %13 = vector.load %arg2[%c2, %c0_9, %c0_10] : memref<3x128x128xbf16, #tpu.memory_space<vmem>>, vector<1x128x128xbf16>
    %14 = vector.shape_cast %13 : vector<1x128x128xbf16> to vector<128x128xbf16>
    %15 = arith.truncf %12 : vector<8x128xf32> to vector<8x128xbf16>
    %cst_11 = arith.constant dense<0.000000e+00> : vector<8x128xf32>
    %16 = tpu.matmul %15, %14, %cst_11 {dimension_numbers = #tpu.dot_dimension_numbers<[1], [0], [0], [1], [0, 0, 1, 1], [], []>} : vector<8x128xbf16>, vector<128x128xbf16>, vector<8x128xf32> -> vector<8x128xf32>
    %17 = math.tanh %16 : vector<8x128xf32>
    %c0_12 = arith.constant 0 : index
    %c0_13 = arith.constant 0 : index
    %18 = vector.load %arg3[%c0_12, %c0_13] : memref<8x128xf32, #tpu.memory_space<vmem>>, vector<8x128xf32>
    tpu.vector_store %arg3[%c0_12, %c0_13], %17 {strides = array<i32>} : memref<8x128xf32, #tpu.memory_space<vmem>>, vector<8x128xf32>,
    return
  }
  func.func @transform_0(%arg0: i32) -> (i32, i32) {
    %c0_i32 = arith.constant 0 : i32
    %c0_i32_0 = arith.constant 0 : i32
    return %arg0, %c0_i32 : i32, i32
  }
  func.func @transform_1(%arg0: i32) -> (i32, i32, i32) {
    %c0_i32 = arith.constant 0 : i32
    %c0_i32_0 = arith.constant 0 : i32
    %c0_i32_1 = arith.constant 0 : i32
    %c0_i32_2 = arith.constant 0 : i32
    return %c0_i32, %c0_i32_0, %c0_i32_1 : i32, i32, i32
  }
  func.func @transform_2(%arg0: i32) -> (i32, i32) {
    %c0_i32 = arith.constant 0 : i32
    %c0_i32_0 = arith.constant 0 : i32
    return %arg0, %c0_i32 : i32, i32
  }
}

</mosaic_0001>

<bundles_post_ra>
// kernel: _policy_forward_impl.1
= control target key start
LH: loop header
LB: loop body
LE: loop exit
PB: predicated region body
PF: predicated region fallthrough
CT: control target
= control target key end

     0   :  { %7 = vsyncpa [#allocation3], 0  ;;  %s424_s12 = smov [#allocation2]   ;;  %s425_s14 = smov 64   ;;  %s451_s0 = inlined_call_operand.vmem [shape: f32[8,128], index: 0, kind: input, shape index: {}]   ;;  %s452_s1 = inlined_call_operand.hbm [shape: bf16[3,128,128], index: 1, kind: input, shape index: {}]   ;;  %s453_s2 = inlined_call_operand.vmem [shape: f32[8,128], index: 2, kind: output, shape index: {}]  }
   0x1   :  { %s14_s11 = sshll.u32 %s452_s1, 4  ;;  %s16_s13 = sshll.u32 %s424_s12, 4  ;;  %s15_s11 = int_to_ptr.hbm [resolvable:$true] %s14_s11  ;;  %s17_s13 = int_to_ptr.vmem [resolvable:$true] %s16_s13 }
   0x2   :  { %s426_s15 = smov 4  }
   0x3   :  { %22 = dma.hbm_to_vmem [thread:$0]  %s15_s11, 3072, %s17_s13, [#allocation3], %s425_s14, %s425_s14, %s426_s15  }
   0x4   :  { %422 = dma.done.wait [#allocation3], 3072  }
   0x5   :  { %423 = vsyncadd [#allocation3], 4294964224  ;;  %v376_v0 = vld [vmem:[#allocation2 + $0x38] sm:$0xff]  ;;  %v375_v1 = vld [vmem:[#allocation2 + $0x30] sm:$0xff] }
   0x6   :  { %93 = vmatpush.bf16.msra.mxu0 %v376_v0  ;;  %v384_v2 = vld [vmem:[#allocation2 + $0x78] sm:$0xff]  ;;  %v383_v3 = vld [vmem:[#allocation2 + $0x70] sm:$0xff]  ;;  %v374_v4 = vld [vmem:[#allocation2 + $0x28] sm:$0xff] }
   0x7   :  { %173 = vmatpush.bf16.msra.mxu1 %v384_v2  ;;  %v382_v5 = vld [vmem:[#allocation2 + $0x68] sm:$0xff]  ;;  %v373_v6 = vld [vmem:[#allocation2 + $0x20] sm:$0xff]  ;;  %v372_v8 = vld [vmem:[#allocation2 + $0x18] sm:$0xff] }
   0x8   :  { %v381_v7 = vld [vmem:[#allocation2 + $0x60] sm:$0xff]  ;;  %v380_v9 = vld [vmem:[#allocation2 + $0x58] sm:$0xff]  ;;  %v371_v10 = vld [vmem:[#allocation2 + $0x10] sm:$0xff] }
   0x9   :  { %v379_v11 = vld [vmem:[#allocation2 + $0x50] sm:$0xff]  ;;  %v370_v12 = vld [vmem:[#allocation2 + $0x8] sm:$0xff]  ;;  %v369_v14 = vld [vmem:[#allocation2] sm:$0xff] }
   0xa   :  { %94 = vmatpush.bf16.msra.mxu0 %v375_v1  ;;  %v378_v13 = vld [vmem:[#allocation2 + $0x48] sm:$0xff]  ;;  %v27_v15 = vld [vmem:[%s451_s0] sm:$0xff]  ;;  %v392_v18 = vld [vmem:[#allocation2 + $0xb8] sm:$0xff] }
   0xb   :  { %174 = vmatpush.bf16.msra.mxu1 %v383_v3  ;;  %v44_v16 = vpack.c.bf16 %v27_v15, %v27_v15  ;;  %v377_v17 = vld [vmem:[#allocation2 + $0x40] sm:$0xff]  ;;  %253 = vmatpush.bf16.msra.mxu2 %v392_v18  ;;  %v391_v19 = vld [vmem:[#allocation2 + $0xb0] sm:$0xff]  ;;  %v390_v20 = vld [vmem:[#allocation2 + $0xa8] sm:$0xff] }
   0xc   :  { %v389_v21 = vld [vmem:[#allocation2 + $0xa0] sm:$0xff]  ;;  %v388_v22 = vld [vmem:[#allocation2 + $0x98] sm:$0xff]  ;;  %v387_v23 = vld [vmem:[#allocation2 + $0x90] sm:$0xff] }
   0xd   :  { %v386_v24 = vld [vmem:[#allocation2 + $0x88] sm:$0xff]  ;;  %v385_v29 = vld [vmem:[#allocation2 + $0x80] sm:$0xff] }
   0xe   :  { %95 = vmatpush.bf16.msra.mxu0 %v374_v4 }
   0xf   :  { %175 = vmatpush.bf16.msra.mxu1 %v382_v5  ;;  %254 = vmatpush.bf16.msra.mxu2 %v391_v19 }
  0x12   :  { %96 = vmatpush.bf16.msra.mxu0 %v373_v6 }
  0x13   :  { %176 = vmatpush.bf16.msra.mxu1 %v381_v7  ;;  %255 = vmatpush.bf16.msra.mxu2 %v390_v20 }
  0x16   :  { %97 = vmatpush.bf16.msra.mxu0 %v372_v8 }
  0x17   :  { %177 = vmatpush.bf16.msra.mxu1 %v380_v9  ;;  %256 = vmatpush.bf16.msra.mxu2 %v389_v21 }
  0x1a   :  { %98 = vmatpush.bf16.msra.mxu0 %v371_v10 }
  0x1b   :  { %178 = vmatpush.bf16.msra.mxu1 %v379_v11  ;;  %257 = vmatpush.bf16.msra.mxu2 %v388_v22 }
  0x1e   :  { %99 = vmatpush.bf16.msra.mxu0 %v370_v12 }
  0x1f   :  { %179 = vmatpush.bf16.msra.mxu1 %v378_v13  ;;  %258 = vmatpush.bf16.msra.mxu2 %v387_v23 }
  0x22   :  { %100 = vmatpush.bf16.msra.mxu0 %v369_v14 }
  0x23   :  { %180 = vmatpush.bf16.msra.mxu1 %v377_v17  ;;  %259 = vmatpush.bf16.msra.mxu2 %v386_v24 }
  0x25   :  { %101 = vmatmul.bf16.vlgmr.msra.gmra.mxu0 %v44_v16 }
  0x27   :  { %260 = vmatpush.bf16.msra.mxu2 %v385_v29 }
  0xa2   :  { %v102_v25 = vpop.f32.mrf.mxu0 }
  0xa3   :  { %v106_v26 = vmax.f32 %v102_v25, 0.0 }
  0xa5   :  { %v124_v27 = vpack.c.bf16 %v106_v26, %v106_v26 }
  0xa7   :  { %181 = vmatmul.bf16.vlgmr.msra.gmra.mxu1 %v124_v27 }
  0xaa   :  { %v104_v28 = vpop.f32.mrf.mxu0 }
 0x124   :  { %v182_v30 = vpop.f32.mrf.mxu1 }
 0x125   :  { %v186_v31 = vmax.f32 %v182_v30, 0.0 }
 0x127   :  { %v204_v32 = vpack.c.bf16 %v186_v31, %v186_v31 }
 0x129   :  { %261 = vmatmul.bf16.vlgmr.msra.gmra.mxu2 %v204_v32 }
 0x12c   :  { %v184_v33 = vpop.f32.mrf.mxu1 }
 0x1ac   :  { %v262_v34 = vpop.f32.mrf.mxu2 }
 0x1ad   :  { %396 = vtanh.f32 %v262_v34 }
 0x1b3   :  { %v397_v35 = vpop.eup %396 }
 0x1b4   :  { %267 = vst [vmem:[%s453_s2] sm:$0xff] %v397_v35  ;;  %v264_v36 = vpop.f32.mrf.mxu2 }
 0x1b5   :  { %272 = vsyncpa [#allocation3], 1 }

</bundles_post_ra>
